<compile_context>
chip_gen: v6e
topology: v6e:2x2x1
jax: 0.10.0
libtpu: 0.0.40
codegen_flags: <defaults>
</compile_context>

<pallas_src>
import jax
import jax.numpy as jnp
from jax.experimental import pallas as pl
from jax.experimental.pallas import tpu as pltpu

IN_FEATURES = 28 * 28      # 784
IN_PAD = 896               # 7 * 128, lane-aligned contraction dim
H1, H2 = 256, 64
N_CLASSES = 10
CLS_PAD = 128              # lane-dense output width
NEG_BIG = -1e30            # bias for padded classes -> softmax prob exactly 0


def _mlp_kernel(x_ref, w1_ref, b1_ref, w2_ref, b2_ref, w3_ref, b3_ref, o_ref):
    x = x_ref[...]                                                   # [TB, 896] bf16

    # fc1 + relu (bf16 MXU, f32 accumulate, f32 elementwise)
    h1 = jnp.dot(x, w1_ref[...], preferred_element_type=jnp.float32) + b1_ref[...]
    h1 = jnp.maximum(h1, 0.0)                                        # [TB, 256] f32

    # fc2 + relu
    h2 = jnp.dot(h1.astype(jnp.bfloat16), w2_ref[...],
                 preferred_element_type=jnp.float32) + b2_ref[...]
    h2 = jnp.maximum(h2, 0.0)                                        # [TB, 64] f32

    # fc3 + softmax over the class dim; padded classes carry bias -1e30 so
    # exp(logit - max) underflows to 0 and only the 10 real classes contribute.
    logits = jnp.dot(h2.astype(jnp.bfloat16), w3_ref[...],
                     preferred_element_type=jnp.float32) + b3_ref[...]   # [TB, 128]
    m = jnp.max(logits, axis=-1, keepdims=True)
    e = jnp.exp(logits - m)
    o_ref[...] = e * pl.reciprocal(jnp.sum(e, axis=-1, keepdims=True), approx=True)


def _round_up(n, m):
    return -(-n // m) * m


def mlp_forward(x, params):
    """x: [B, 784] float32. params: dict from init_params (PyTorch shapes, transposed)."""
    B, F = x.shape
    assert F == IN_FEATURES

    # Batch tile: 256 rows feeds full MXU height on v6e/v7x (multiple of 128 for
    # v5e); small batches round up to a sublane multiple and run one grid step.
    TB = 256 if B >= 256 else _round_up(B, 8)
    B_pad = _round_up(B, TB)
    grid = (B_pad // TB,)

    # Pad + cast matmul operands to bf16; biases stay f32.
    x_p = jnp.pad(x, ((0, B_pad - B), (0, IN_PAD - F))).astype(jnp.bfloat16)
    w1 = jnp.pad(params["w1"], ((0, IN_PAD - F), (0, 0))).astype(jnp.bfloat16)
    b1 = params["b1"].astype(jnp.float32)
    w2 = params["w2"].astype(jnp.bfloat16)
    b2 = params["b2"].astype(jnp.float32)
    w3 = jnp.pad(params["w3"], ((0, 0), (0, CLS_PAD - N_CLASSES))).astype(jnp.bfloat16)
    b3 = jnp.pad(params["b3"], ((0, 0), (0, CLS_PAD - N_CLASSES)),
                 constant_values=NEG_BIG).astype(jnp.float32)

    def const(shape):
        # Constant block index -> weight/bias stays VMEM-resident across the grid.
        return pl.BlockSpec(shape, lambda i: (0, 0))

    out = pl.pallas_call(
        _mlp_kernel,
        out_shape=jax.ShapeDtypeStruct((B_pad, CLS_PAD), jnp.float32),
        grid=grid,
        in_specs=[
            pl.BlockSpec((TB, IN_PAD), lambda i: (i, 0)),            # x batch tile
            const((IN_PAD, H1)), const((1, H1)),                     # fc1
            const((H1, H2)), const((1, H2)),                         # fc2
            const((H2, CLS_PAD)), const((1, CLS_PAD)),               # fc3
        ],
        out_specs=pl.BlockSpec((TB, CLS_PAD), lambda i: (i, 0)),
        compiler_params=pltpu.CompilerParams(
            dimension_semantics=("parallel",),                       # 2 TCs on v7x
        ),
    )(x_p, w1, b1, w2, b2, w3, b3)

    return out[:B, :N_CLASSES]


def init_params(key):
    """Deterministic synthetic parameters with the same shapes as Net.__init__.

    PyTorch nn.Linear stores weight as [out, in]; we store the transpose
    [in, out] so the kernel computes x @ W.  Biases kept 2D ([1, out]).
    """
    k1, k2, k3, k4, k5, k6 = jax.random.split(key, 6)

    def uniform(k, shape, fan_in):
        bound = 1.0 / jnp.sqrt(fan_in)
        return jax.random.uniform(k, shape, jnp.float32, -bound, bound)

    return {
        "w1": uniform(k1, (IN_FEATURES, H1), 784.0),
        "b1": uniform(k2, (1, H1), 784.0),
        "w2": uniform(k3, (H1, H2), 256.0),
        "b2": uniform(k4, (1, H2), 256.0),
        "w3": uniform(k5, (H2, N_CLASSES), 64.0),
        "b3": uniform(k6, (1, N_CLASSES), 64.0),
    }


def _reference(x, params):
    h1 = jnp.maximum(x @ params["w1"] + params["b1"], 0.0)
    h2 = jnp.maximum(h1 @ params["w2"] + params["b2"], 0.0)
    logits = h2 @ params["w3"] + params["b3"]
    return jax.nn.softmax(logits, axis=-1)


if __name__ == "__main__":
    key = jax.random.PRNGKey(0)
    pkey, xkey = jax.random.split(key)

    params = init_params(pkey)
    batch = 8
    x = jax.random.normal(xkey, (batch, IN_FEATURES), dtype=jnp.float32)

    out = mlp_forward(x, params)
    out = jax.block_until_ready(out)

    ref = _reference(x, params)
    assert out.shape == (batch, N_CLASSES)
    # bf16 matmul operands + approx reciprocal -> relaxed tolerance vs f32 ref.
    assert jnp.allclose(out, ref, atol=3e-2, rtol=3e-2)
    # softmax rows sum to 1
    assert jnp.allclose(jnp.sum(out, axis=-1), 1.0, atol=1e-2)

    print("KERNEL_OK")
</pallas_src>

<mosaic_0001>
module attributes {stable_mosaic.version = 11 : i64} {
  func.func @_mlp_kernel(%arg0: i32, %arg1: memref<8x896xbf16, #tpu.memory_space<vmem>>, %arg2: memref<896x256xbf16, #tpu.memory_space<vmem>>, %arg3: memref<1x256xf32, #tpu.memory_space<vmem>>, %arg4: memref<256x64xbf16, #tpu.memory_space<vmem>>, %arg5: memref<1x64xf32, #tpu.memory_space<vmem>>, %arg6: memref<64x128xbf16, #tpu.memory_space<vmem>>, %arg7: memref<1x128xf32, #tpu.memory_space<vmem>>, %arg8: memref<8x128xf32, #tpu.memory_space<vmem>>) attributes {dimension_semantics = [#tpu.dimension_semantics<parallel>], iteration_bounds = array<i64: 1>, scalar_prefetch = 0 : i64, scratch_operands = 0 : i64, tpu.core_type = #tpu.core_type<tc>, window_params = [{transform_indices = @transform_0, window_bounds = array<i64: 8, 896>}, {pipeline_mode = #tpu.pipeline_mode<synchronous>, transform_indices = @transform_1, window_bounds = array<i64: 896, 256>}, {pipeline_mode = #tpu.pipeline_mode<synchronous>, transform_indices = @transform_2, window_bounds = array<i64: 1, 256>}, {pipeline_mode = #tpu.pipeline_mode<synchronous>, transform_indices = @transform_3, window_bounds = array<i64: 256, 64>}, {pipeline_mode = #tpu.pipeline_mode<synchronous>, transform_indices = @transform_4, window_bounds = array<i64: 1, 64>}, {pipeline_mode = #tpu.pipeline_mode<synchronous>, transform_indices = @transform_5, window_bounds = array<i64: 64, 128>}, {pipeline_mode = #tpu.pipeline_mode<synchronous>, transform_indices = @transform_6, window_bounds = array<i64: 1, 128>}, {transform_indices = @transform_7, window_bounds = array<i64: 8, 128>}]} {
    %c0 = arith.constant 0 : index
    %c0_0 = arith.constant 0 : index
    %0 = vector.load %arg1[%c0, %c0_0] : memref<8x896xbf16, #tpu.memory_space<vmem>>, vector<8x896xbf16>
    %c0_1 = arith.constant 0 : index
    %c0_2 = arith.constant 0 : index
    %1 = vector.load %arg2[%c0_1, %c0_2] : memref<896x256xbf16, #tpu.memory_space<vmem>>, vector<896x256xbf16>
    %cst = arith.constant dense<0.000000e+00> : vector<8x256xf32>
    %2 = tpu.matmul %0, %1, %cst {dimension_numbers = #tpu.dot_dimension_numbers<[1], [0], [0], [1], [0, 0, 1, 1], [], []>} : vector<8x896xbf16>, vector<896x256xbf16>, vector<8x256xf32> -> vector<8x256xf32>
    %c0_3 = arith.constant 0 : index
    %c0_4 = arith.constant 0 : index
    %3 = vector.load %arg3[%c0_3, %c0_4] : memref<1x256xf32, #tpu.memory_space<vmem>>, vector<1x256xf32>
    %4 = vector.broadcast %3 : vector<1x256xf32> to vector<8x256xf32>
    %5 = arith.addf %2, %4 : vector<8x256xf32>
    %cst_5 = arith.constant 0.000000e+00 : f32
    %6 = vector.broadcast %cst_5 : f32 to vector<8x256xf32>
    %7 = arith.maximumf %5, %6 : vector<8x256xf32>
    %8 = arith.truncf %7 : vector<8x256xf32> to vector<8x256xbf16>
    %c0_6 = arith.constant 0 : index
    %c0_7 = arith.constant 0 : index
    %9 = vector.load %arg4[%c0_6, %c0_7] : memref<256x64xbf16, #tpu.memory_space<vmem>>, vector<256x64xbf16>
    %cst_8 = arith.constant dense<0.000000e+00> : vector<8x64xf32>
    %10 = tpu.matmul %8, %9, %cst_8 {dimension_numbers = #tpu.dot_dimension_numbers<[1], [0], [0], [1], [0, 0, 1, 1], [], []>} : vector<8x256xbf16>, vector<256x64xbf16>, vector<8x64xf32> -> vector<8x64xf32>
    %c0_9 = arith.constant 0 : index
    %c0_10 = arith.constant 0 : index
    %11 = vector.load %arg5[%c0_9, %c0_10] : memref<1x64xf32, #tpu.memory_space<vmem>>, vector<1x64xf32>
    %12 = vector.broadcast %11 : vector<1x64xf32> to vector<8x64xf32>
    %13 = arith.addf %10, %12 : vector<8x64xf32>
    %cst_11 = arith.constant 0.000000e+00 : f32
    %14 = vector.broadcast %cst_11 : f32 to vector<8x64xf32>
    %15 = arith.maximumf %13, %14 : vector<8x64xf32>
    %16 = arith.truncf %15 : vector<8x64xf32> to vector<8x64xbf16>
    %c0_12 = arith.constant 0 : index
    %c0_13 = arith.constant 0 : index
    %17 = vector.load %arg6[%c0_12, %c0_13] : memref<64x128xbf16, #tpu.memory_space<vmem>>, vector<64x128xbf16>
    %cst_14 = arith.constant dense<0.000000e+00> : vector<8x128xf32>
    %18 = tpu.matmul %16, %17, %cst_14 {dimension_numbers = #tpu.dot_dimension_numbers<[1], [0], [0], [1], [0, 0, 1, 1], [], []>} : vector<8x64xbf16>, vector<64x128xbf16>, vector<8x128xf32> -> vector<8x128xf32>
    %c0_15 = arith.constant 0 : index
    %c0_16 = arith.constant 0 : index
    %19 = vector.load %arg7[%c0_15, %c0_16] : memref<1x128xf32, #tpu.memory_space<vmem>>, vector<1x128xf32>
    %20 = vector.broadcast %19 : vector<1x128xf32> to vector<8x128xf32>
    %21 = arith.addf %18, %20 : vector<8x128xf32>
    %cst_17 = arith.constant dense<0xFF800000> : vector<8xf32>
    %22 = vector.multi_reduction <maximumf>, %21, %cst_17 [1] : vector<8x128xf32> to vector<8xf32>
    %23 = vector.shape_cast %22 : vector<8xf32> to vector<8x1xf32>
    %24 = vector.broadcast %23 : vector<8x1xf32> to vector<8x128xf32>
    %25 = arith.subf %21, %24 : vector<8x128xf32>
    %26 = math.exp %25 : vector<8x128xf32>
    %cst_18 = arith.constant dense<0.000000e+00> : vector<8xf32>
    %27 = vector.multi_reduction <add>, %26, %cst_18 [1] : vector<8x128xf32> to vector<8xf32>
    %28 = vector.shape_cast %27 : vector<8xf32> to vector<8x1xf32>
    %29 = tpu.reciprocal %28 {approx = true} : vector<8x1xf32> -> vector<8x1xf32>
    %30 = vector.broadcast %29 : vector<8x1xf32> to vector<8x128xf32>
    %31 = arith.mulf %26, %30 : vector<8x128xf32>
    %c0_19 = arith.constant 0 : index
    %c0_20 = arith.constant 0 : index
    %32 = vector.load %arg8[%c0_19, %c0_20] : memref<8x128xf32, #tpu.memory_space<vmem>>, vector<8x128xf32>
    tpu.vector_store %arg8[%c0_19, %c0_20], %31 {strides = array<i32>} : memref<8x128xf32, #tpu.memory_space<vmem>>, vector<8x128xf32>,
    return
  }
  func.func @transform_0(%arg0: i32) -> (i32, i32) {
    %c0_i32 = arith.constant 0 : i32
    %c0_i32_0 = arith.constant 0 : i32
    return %arg0, %c0_i32 : i32, i32
  }
  func.func @transform_1(%arg0: i32) -> (i32, i32) {
    %c0_i32 = arith.constant 0 : i32
    %c0_i32_0 = arith.constant 0 : i32
    %c0_i32_1 = arith.constant 0 : i32
    return %c0_i32, %c0_i32_0 : i32, i32
  }
  func.func @transform_2(%arg0: i32) -> (i32, i32) {
    %c0_i32 = arith.constant 0 : i32
    %c0_i32_0 = arith.constant 0 : i32
    %c0_i32_1 = arith.constant 0 : i32
    return %c0_i32, %c0_i32_0 : i32, i32
  }
  func.func @transform_3(%arg0: i32) -> (i32, i32) {
    %c0_i32 = arith.constant 0 : i32
    %c0_i32_0 = arith.constant 0 : i32
    %c0_i32_1 = arith.constant 0 : i32
    return %c0_i32, %c0_i32_0 : i32, i32
  }
  func.func @transform_4(%arg0: i32) -> (i32, i32) {
    %c0_i32 = arith.constant 0 : i32
    %c0_i32_0 = arith.constant 0 : i32
    %c0_i32_1 = arith.constant 0 : i32
    return %c0_i32, %c0_i32_0 : i32, i32
  }
  func.func @transform_5(%arg0: i32) -> (i32, i32) {
    %c0_i32 = arith.constant 0 : i32
    %c0_i32_0 = arith.constant 0 : i32
    %c0_i32_1 = arith.constant 0 : i32
    return %c0_i32, %c0_i32_0 : i32, i32
  }
  func.func @transform_6(%arg0: i32) -> (i32, i32) {
    %c0_i32 = arith.constant 0 : i32
    %c0_i32_0 = arith.constant 0 : i32
    %c0_i32_1 = arith.constant 0 : i32
    return %c0_i32, %c0_i32_0 : i32, i32
  }
  func.func @transform_7(%arg0: i32) -> (i32, i32) {
    %c0_i32 = arith.constant 0 : i32
    %c0_i32_0 = arith.constant 0 : i32
    return %arg0, %c0_i32 : i32, i32
  }
}

</mosaic_0001>

<bundles_post_ra>
// kernel: tpu_custom_call.1
= control target key start
LH: loop header
LB: loop body
LE: loop exit
PB: predicated region body
PF: predicated region fallthrough
CT: control target
= control target key end

     0   :  { %12 = vsyncpa [#allocation3], 0  ;;  %s1779_s0 = inlined_call_operand.vmem [shape: bf16[8,896], index: 0, kind: input, shape index: {}]   ;;  %s1780_s1 = inlined_call_operand.hbm [shape: bf16[896,256], index: 1, kind: input, shape index: {}]   ;;  %s1781_s2 = inlined_call_operand.vmem [shape: f32[1,256], index: 2, kind: input, shape index: {}]   ;;  %s1782_s3 = inlined_call_operand.vmem [shape: bf16[256,64], index: 3, kind: input, shape index: {}]   ;;  %s1783_s4 = inlined_call_operand.vmem [shape: f32[1,64], index: 4, kind: input, shape index: {}]   ;;  %s1784_s5 = inlined_call_operand.vmem [shape: bf16[64,128], index: 5, kind: input, shape index: {}]   ;;  %s1785_s6 = inlined_call_operand.vmem [shape: f32[1,128], index: 6, kind: input, shape index: {}]   ;;  %s1786_s7 = inlined_call_operand.hbm [shape: f32[8,128], index: 7, kind: output, shape index: {}]  }
   0x1   :  { %13 = vsyncpa [#allocation4], 0  ;;  %s1639_s24 = smov [#allocation2]  }
   0x2   :  { %s21_s25 = sshll.u32 %s1639_s24, 4  ;;  %s22_s25 = int_to_ptr.vmem [resolvable:$true] %s21_s25 }
   0x3   :  { %s1603_s26 = scalar_lea.vmem %s22_s25, 14336  ;;  %p1608_p1 = scmp.lt.s32.totalorder %s22_s25, %s22_s25 }
   0x4   :  { %p1604_p0 = scmp.ne.s32.totalorder %s22_s25, %s1603_s26  ;;  %p1609_p2 = scmp.lt.s32.totalorder %s1603_s26, %s1603_s26 }
   0x6   :  { %p1610_p3 = por %p1609_p2, %p1608_p1 }
   0x8   :  { %p1611_p4 = pnand %p1610_p3, %p1604_p0 }
   0xa   :  { %1614 = shalt.err (!%p1611_p4)
}
   0xb   :  { %s1640_s27 = smov 128   ;;  %s1641_s28 = smov 8  }
   0xc   :  { %27 = dma.hbm_to_vmem [thread:$0]  %s1780_s1, 14336, %s22_s25, [#allocation3], %s1640_s27, %s1640_s27, %s1641_s28  }
   0xd   :  { %1635 = dma.done.wait [#allocation3], 14336  }
   0xe   :  { %1636 = vsyncadd [#allocation3], 4294952960  ;;  %v1396_v0 = vld [vmem:[#allocation2 + $0x74] ss:$8 sps:$4 sm:$0xff]   ;;  %v1398_v1 = vld [vmem:[#allocation2 + $0x70] ss:$8 sps:$4 sm:$0xff]  }
   0xf   :  { %755 = vmatprep.subr.bf16.mxu0 %v1396_v0  ;;  %v1399_v2 = vld [vmem:[#allocation2 + $0x174] ss:$8 sps:$4 sm:$0xff]   ;;  %v1401_v3 = vld [vmem:[#allocation2 + $0x170] ss:$8 sps:$4 sm:$0xff]   ;;  %v1402_v4 = vld [vmem:[#allocation2 + $0x64] ss:$8 sps:$4 sm:$0xff]  }
  0x10   :  { %756 = vmatpush1.bf16.msra.mxu0 %v1398_v1  ;;  %v1404_v5 = vld [vmem:[#allocation2 + $0x60] ss:$8 sps:$4 sm:$0xff]   ;;  %796 = vmatprep.subr.bf16.mxu1 %v1399_v2  ;;  %v1405_v6 = vld [vmem:[#allocation2 + $0x164] ss:$8 sps:$4 sm:$0xff]   ;;  %v1408_v8 = vld [vmem:[#allocation2 + $0x54] ss:$8 sps:$4 sm:$0xff]  }
  0x11   :  { %797 = vmatpush1.bf16.msra.mxu1 %v1401_v3  ;;  %757 = vmatprep.subr.bf16.mxu0 %v1402_v4  ;;  %v1407_v7 = vld [vmem:[#allocation2 + $0x160] ss:$8 sps:$4 sm:$0xff]   ;;  %v1410_v9 = vld [vmem:[#allocation2 + $0x50] ss:$8 sps:$4 sm:$0xff]   ;;  %v1411_v10 = vld [vmem:[#allocation2 + $0x154] ss:$8 sps:$4 sm:$0xff]  }
  0x12   :  { %798 = vmatprep.subr.bf16.mxu1 %v1405_v6  ;;  %v1414_v11 = vld [vmem:[#allocation2 + $0x44] ss:$8 sps:$4 sm:$0xff]   ;;  %v1413_v12 = vld [vmem:[#allocation2 + $0x150] ss:$8 sps:$4 sm:$0xff]   ;;  %v1416_v14 = vld [vmem:[#allocation2 + $0x40] ss:$8 sps:$4 sm:$0xff]  }
  0x13   :  { %v1417_v13 = vld [vmem:[#allocation2 + $0x144] ss:$8 sps:$4 sm:$0xff]   ;;  %v1420_v15 = vld [vmem:[#allocation2 + $0x34] ss:$8 sps:$4 sm:$0xff]   ;;  %v1419_v16 = vld [vmem:[#allocation2 + $0x140] ss:$8 sps:$4 sm:$0xff]  }
  0x14   :  { %758 = vmatpush1.bf16.msra.mxu0 %v1404_v5  ;;  %v1423_v17 = vld [vmem:[#allocation2 + $0x134] ss:$8 sps:$4 sm:$0xff]   ;;  %v1422_v18 = vld [vmem:[#allocation2 + $0x30] ss:$8 sps:$4 sm:$0xff]   ;;  %v1426_v19 = vld [vmem:[#allocation2 + $0x24] ss:$8 sps:$4 sm:$0xff]  }
  0x15   :  { %759 = vmatprep.subr.bf16.mxu0 %v1408_v8  ;;  %799 = vmatpush1.bf16.msra.mxu1 %v1407_v7  ;;  %v1425_v20 = vld [vmem:[#allocation2 + $0x130] ss:$8 sps:$4 sm:$0xff]   ;;  %v1429_v21 = vld [vmem:[#allocation2 + $0x124] ss:$8 sps:$4 sm:$0xff]   ;;  %v1428_v22 = vld [vmem:[#allocation2 + $0x20] ss:$8 sps:$4 sm:$0xff]  }
  0x16   :  { %800 = vmatprep.subr.bf16.mxu1 %v1411_v10  ;;  %v1432_v23 = vld [vmem:[#allocation2 + $0x14] ss:$8 sps:$4 sm:$0xff]   ;;  %v1431_v24 = vld [vmem:[#allocation2 + $0x120] ss:$8 sps:$4 sm:$0xff]   ;;  %v1434_v26 = vld [vmem:[#allocation2 + $0x10] ss:$8 sps:$4 sm:$0xff]  }
  0x17   :  { %v1435_v25 = vld [vmem:[#allocation2 + $0x114] ss:$8 sps:$4 sm:$0xff]   ;;  %v1438_v27 = vld [vmem:[#allocation2 + $0x4] ss:$8 sps:$4 sm:$0xff]   ;;  %v1437_v28 = vld [vmem:[#allocation2 + $0x110] ss:$8 sps:$4 sm:$0xff]  }
  0x18   :  { %760 = vmatpush1.bf16.msra.mxu0 %v1410_v9  ;;  %v1441_v29 = vld [vmem:[#allocation2 + $0x104] ss:$8 sps:$4 sm:$0xff]   ;;  %v1440_v30 = vld [vmem:[#allocation2] ss:$8 sps:$4 sm:$0xff]   ;;  %v1444_v31 = vld [vmem:[#allocation2 + $0xf4] ss:$8 sps:$4 sm:$0xff]  }
  0x19   :  { %761 = vmatprep.subr.bf16.mxu0 %v1414_v11  ;;  %801 = vmatpush1.bf16.msra.mxu1 %v1413_v12  ;;  %v1443_v32 = vld [vmem:[#allocation2 + $0x100] ss:$8 sps:$4 sm:$0xff]   ;;  %v1447_v33 = vld [vmem:[#allocation2 + $0x1f4] ss:$8 sps:$4 sm:$0xff]   ;;  %v1446_v34 = vld [vmem:[#allocation2 + $0xf0] ss:$8 sps:$4 sm:$0xff]  }
  0x1a   :  { %802 = vmatprep.subr.bf16.mxu1 %v1417_v13  ;;  %v1450_v35 = vld [vmem:[#allocation2 + $0xe4] ss:$8 sps:$4 sm:$0xff]   ;;  %v1449_v36 = vld [vmem:[#allocation2 + $0x1f0] ss:$8 sps:$4 sm:$0xff]   ;;  %v1452_v38 = vld [vmem:[#allocation2 + $0xe0] ss:$8 sps:$4 sm:$0xff]  }
  0x1b   :  { %v1453_v37 = vld [vmem:[#allocation2 + $0x1e4] ss:$8 sps:$4 sm:$0xff]   ;;  %v1456_v39 = vld [vmem:[#allocation2 + $0xd4] ss:$8 sps:$4 sm:$0xff]   ;;  %v1455_v40 = vld [vmem:[#allocation2 + $0x1e0] ss:$8 sps:$4 sm:$0xff]  }
  0x1c   :  { %762 = vmatpush1.bf16.msra.mxu0 %v1416_v14  ;;  %v1459_v41 = vld [vmem:[#allocation2 + $0x1d4] ss:$8 sps:$4 sm:$0xff]   ;;  %v1458_v42 = vld [vmem:[#allocation2 + $0xd0] ss:$8 sps:$4 sm:$0xff]   ;;  %v1462_v43 = vld [vmem:[#allocation2 + $0xc4] ss:$8 sps:$4 sm:$0xff]  }
  0x1d   :  { %763 = vmatprep.subr.bf16.mxu0 %v1420_v15  ;;  %803 = vmatpush1.bf16.msra.mxu1 %v1419_v16  ;;  %v1461_v44 = vld [vmem:[#allocation2 + $0x1d0] ss:$8 sps:$4 sm:$0xff]   ;;  %v1465_v45 = vld [vmem:[#allocation2 + $0x1c4] ss:$8 sps:$4 sm:$0xff]   ;;  %v1464_v47 = vld [vmem:[#allocation2 + $0xc0] ss:$8 sps:$4 sm:$0xff]  }
  0x1e   :  { %804 = vmatprep.subr.bf16.mxu1 %v1423_v17  ;;  %v42_v46 = vld [vmem:[%s1779_s0] sm:$0xff]  ;;  %v1468_v49 = vld [vmem:[#allocation2 + $0xb4] ss:$8 sps:$4 sm:$0xff]   ;;  %v43_v50 = vld [vmem:[%s1779_s0 + $0x8] sm:$0xff]  ;;  %v1642_v15 = vmov 0   ;;  %vm1644_vm0 = vmmov 0  }
  0x1f   :  { %v1209_v48 = vcombine.high %v42_v46, %v42_v46  ;;  %v1467_v51 = vld [vmem:[#allocation2 + $0x1c0] ss:$8 sps:$4 sm:$0xff]   ;;  %v1211_v52 = vcombine.high %v43_v50, %v43_v50  ;;  %v1471_v53 = vld [vmem:[#allocation2 + $0x1b4] ss:$8 sps:$4 sm:$0xff]   ;;  %v1470_v54 = vld [vmem:[#allocation2 + $0xb0] ss:$8 sps:$4 sm:$0xff]   ;;  %v1208_v5 = vcombine.low %v42_v46, %v42_v46  ;;  %v1210_v8 = vcombine.low %v43_v50, %v43_v50 }
  0x20   :  { %764 = vmatpush1.bf16.msra.mxu0 %v1422_v18  ;;  %v1474_v55 = vld [vmem:[#allocation2 + $0xa4] ss:$8 sps:$4 sm:$0xff]   ;;  %v1473_v56 = vld [vmem:[#allocation2 + $0x1b0] ss:$8 sps:$4 sm:$0xff]   ;;  %v1476_v58 = vld [vmem:[#allocation2 + $0xa0] ss:$8 sps:$4 sm:$0xff]  }
  0x21   :  { %765 = vmatprep.subr.bf16.mxu0 %v1426_v19  ;;  %805 = vmatpush1.bf16.msra.mxu1 %v1425_v20  ;;  %v1477_v57 = vld [vmem:[#allocation2 + $0x1a4] ss:$8 sps:$4 sm:$0xff]   ;;  %v1480_v59 = vld [vmem:[#allocation2 + $0x94] ss:$8 sps:$4 sm:$0xff]   ;;  %v1479_v60 = vld [vmem:[#allocation2 + $0x1a0] ss:$8 sps:$4 sm:$0xff]  }
  0x22   :  { %806 = vmatprep.subr.bf16.mxu1 %v1429_v21  ;;  %787 = vmatprep.mubr.bf16.mxu0 %v1209_v48  ;;  %v1483_v61 = vld [vmem:[#allocation2 + $0x194] ss:$8 sps:$4 sm:$0xff]   ;;  %v1482_v62 = vld [vmem:[#allocation2 + $0x90] ss:$8 sps:$4 sm:$0xff]   ;;  %v1486_v63 = vld [vmem:[#allocation2 + $0x84] ss:$8 sps:$4 sm:$0xff]  }
  0x23   :  { %828 = vmatprep.mubr.bf16.mxu1 %v1211_v52  ;;  %v1485_v0 = vld [vmem:[#allocation2 + $0x190] ss:$8 sps:$4 sm:$0xff]   ;;  %v1489_v1 = vld [vmem:[#allocation2 + $0x184] ss:$8 sps:$4 sm:$0xff]   ;;  %v1488_v2 = vld [vmem:[#allocation2 + $0x80] ss:$8 sps:$4 sm:$0xff]  }
  0x24   :  { %766 = vmatpush1.bf16.msra.mxu0 %v1428_v22  ;;  %v1496_v3 = vld [vmem:[#allocation2 + $0x274] ss:$8 sps:$4 sm:$0xff]   ;;  %v1493_v4 = vld [vmem:[#allocation2 + $0x180] ss:$8 sps:$4 sm:$0xff]   ;;  %v1494_v7 = vld [vmem:[#allocation2 + $0x270] ss:$8 sps:$4 sm:$0xff]  }
  0x25   :  { %767 = vmatprep.subr.bf16.mxu0 %v1432_v23  ;;  %807 = vmatpush1.bf16.msra.mxu1 %v1431_v24  ;;  %v1522_v6 = vld [vmem:[#allocation2 + $0x374] ss:$8 sps:$4 sm:$0xff]   ;;  %v1501_v9 = vld [vmem:[#allocation2 + $0x264] ss:$8 sps:$4 sm:$0xff]   ;;  %v1520_v10 = vld [vmem:[#allocation2 + $0x370] ss:$8 sps:$4 sm:$0xff]  }
  0x26   :  { %808 = vmatprep.subr.bf16.mxu1 %v1435_v25  ;;  %v1528_v11 = vld [vmem:[#allocation2 + $0x364] ss:$8 sps:$4 sm:$0xff]   ;;  %v1499_v12 = vld [vmem:[#allocation2 + $0x260] ss:$8 sps:$4 sm:$0xff]   ;;  %v1504_v13 = vld [vmem:[#allocation2 + $0x254] ss:$8 sps:$4 sm:$0xff]  }
  0x27   :  { %v1526_v14 = vld [vmem:[#allocation2 + $0x360] ss:$8 sps:$4 sm:$0xff]   ;;  %v1534_v16 = vld [vmem:[#allocation2 + $0x354] ss:$8 sps:$4 sm:$0xff]   ;;  %v1502_v17 = vld [vmem:[#allocation2 + $0x250] ss:$8 sps:$4 sm:$0xff]  }
  0x28   :  { %768 = vmatpush1.bf16.msra.mxu0 %v1434_v26  ;;  %v1507_v18 = vld [vmem:[#allocation2 + $0x244] ss:$8 sps:$4 sm:$0xff]   ;;  %v1505_v19 = vld [vmem:[#allocation2 + $0x240] ss:$8 sps:$4 sm:$0xff]   ;;  %v1532_v20 = vld [vmem:[#allocation2 + $0x350] ss:$8 sps:$4 sm:$0xff]  }
  0x29   :  { %769 = vmatprep.subr.bf16.mxu0 %v1438_v27  ;;  %809 = vmatpush1.bf16.msra.mxu1 %v1437_v28  ;;  %v1540_v21 = vld [vmem:[#allocation2 + $0x344] ss:$8 sps:$4 sm:$0xff]   ;;  %v1510_v22 = vld [vmem:[#allocation2 + $0x234] ss:$8 sps:$4 sm:$0xff]   ;;  %v1538_v23 = vld [vmem:[#allocation2 + $0x340] ss:$8 sps:$4 sm:$0xff]  }
  0x2a   :  { %810 = vmatprep.subr.bf16.mxu1 %v1441_v29  ;;  %v1546_v24 = vld [vmem:[#allocation2 + $0x334] ss:$8 sps:$4 sm:$0xff]   ;;  %v1508_v26 = vld [vmem:[#allocation2 + $0x230] ss:$8 sps:$4 sm:$0xff]   ;;  %v1513_v28 = vld [vmem:[#allocation2 + $0x224] ss:$8 sps:$4 sm:$0xff]  }
  0x2b   :  { %v1698_v25 = vld [vmem:[%s1779_s0 + $0x10] sm:$0xff]  ;;  %v1543_v48 = vld [vmem:[#allocation2 + $0x2c4] ss:$8 sps:$4 sm:$0xff]   ;;  %vm1139_vm1 = vcmask 523264  }
  0x2c   :  { %770 = vmatpush1.bf16.msra.mxu0 %v1440_v30  ;;  %v1213_v27 = vcombine.high %v1698_v25, %v1698_v25  ;;  %v1544_v29 = vld [vmem:[#allocation2 + $0x330] ss:$8 sps:$4 sm:$0xff]   ;;  %v1552_v30 = vld [vmem:[#allocation2 + $0x324] ss:$8 sps:$4 sm:$0xff]   ;;  %v1537_v46 = vld [vmem:[#allocation2 + $0x2d4] ss:$8 sps:$4 sm:$0xff]  }
  0x2d   :  { %771 = vmatprep.subr.bf16.mxu0 %v1444_v31  ;;  %811 = vmatpush1.bf16.msra.mxu1 %v1443_v32  ;;  %v1511_v31 = vld [vmem:[#allocation2 + $0x220] ss:$8 sps:$4 sm:$0xff]   ;;  %v1516_v32 = vld [vmem:[#allocation2 + $0x214] ss:$8 sps:$4 sm:$0xff]   ;;  %v1555_v52 = vld [vmem:[#allocation2 + $0x2a4] ss:$8 sps:$4 sm:$0xff]  }
  0x2e   :  { %812 = vmatprep.subr.bf16.mxu1 %v1447_v33  ;;  %v1550_v33 = vld [vmem:[#allocation2 + $0x320] ss:$8 sps:$4 sm:$0xff]   ;;  %v1549_v50 = vld [vmem:[#allocation2 + $0x2b4] ss:$8 sps:$4 sm:$0xff]  }
  0x30   :  { %772 = vmatpush2.bf16.msra.mxu0 %v1446_v34  ;;  %v1558_v34 = vld [vmem:[#allocation2 + $0x314] ss:$8 sps:$4 sm:$0xff]  }
  0x31   :  { %773 = vmatprep.subr.bf16.mxu0 %v1450_v35  ;;  %813 = vmatpush2.bf16.msra.mxu1 %v1449_v36  ;;  %v1514_v35 = vld [vmem:[#allocation2 + $0x210] ss:$8 sps:$4 sm:$0xff]   ;;  %v1519_v36 = vld [vmem:[#allocation2 + $0x204] ss:$8 sps:$4 sm:$0xff]  }
  0x32   :  { %814 = vmatprep.subr.bf16.mxu1 %v1453_v37  ;;  %v1556_v37 = vld [vmem:[#allocation2 + $0x310] ss:$8 sps:$4 sm:$0xff]  }
  0x34   :  { %774 = vmatpush2.bf16.msra.mxu0 %v1452_v38  ;;  %v1564_v38 = vld [vmem:[#allocation2 + $0x304] ss:$8 sps:$4 sm:$0xff]  }
  0x35   :  { %775 = vmatprep.subr.bf16.mxu0 %v1456_v39  ;;  %815 = vmatpush2.bf16.msra.mxu1 %v1455_v40  ;;  %v1517_v39 = vld [vmem:[#allocation2 + $0x200] ss:$8 sps:$4 sm:$0xff]   ;;  %v1525_v40 = vld [vmem:[#allocation2 + $0x2f4] ss:$8 sps:$4 sm:$0xff]  }
  0x36   :  { %816 = vmatprep.subr.bf16.mxu1 %v1459_v41  ;;  %v1562_v41 = vld [vmem:[#allocation2 + $0x300] ss:$8 sps:$4 sm:$0xff]  }
  0x38   :  { %776 = vmatpush2.bf16.msra.mxu0 %v1458_v42  ;;  %v1523_v42 = vld [vmem:[#allocation2 + $0x2f0] ss:$8 sps:$4 sm:$0xff]  }
  0x39   :  { %777 = vmatprep.subr.bf16.mxu0 %v1462_v43  ;;  %817 = vmatpush2.bf16.msra.mxu1 %v1461_v44  ;;  %v1531_v43 = vld [vmem:[#allocation2 + $0x2e4] ss:$8 sps:$4 sm:$0xff]   ;;  %v1568_v44 = vld [vmem:[%s1779_s0 + $0x18] ss:$0 sps:$4 sm:$0xff]  }
  0x3a   :  { %818 = vmatprep.subr.bf16.mxu1 %v1465_v45  ;;  %v1529_v45 = vld [vmem:[#allocation2 + $0x2e0] ss:$8 sps:$4 sm:$0xff]  }
  0x3c   :  { %778 = vmatpush2.bf16.msra.mxu0 %v1464_v47  ;;  %v1535_v47 = vld [vmem:[#allocation2 + $0x2d0] ss:$8 sps:$4 sm:$0xff]  }
  0x3d   :  { %779 = vmatprep.subr.bf16.mxu0 %v1468_v49  ;;  %819 = vmatpush2.bf16.msra.mxu1 %v1467_v51  ;;  %v1541_v49 = vld [vmem:[#allocation2 + $0x2c0] ss:$8 sps:$4 sm:$0xff]   ;;  %v1547_v51 = vld [vmem:[#allocation2 + $0x2b0] ss:$8 sps:$4 sm:$0xff]  }
  0x3e   :  { %820 = vmatprep.subr.bf16.mxu1 %v1471_v53  ;;  %v1553_v53 = vld [vmem:[#allocation2 + $0x2a0] ss:$8 sps:$4 sm:$0xff]  }
  0x40   :  { %780 = vmatpush2.bf16.msra.mxu0 %v1470_v54  ;;  %v1561_v54 = vld [vmem:[#allocation2 + $0x294] ss:$8 sps:$4 sm:$0xff]  }
  0x41   :  { %781 = vmatprep.subr.bf16.mxu0 %v1474_v55  ;;  %821 = vmatpush2.bf16.msra.mxu1 %v1473_v56  ;;  %v1559_v55 = vld [vmem:[#allocation2 + $0x290] ss:$8 sps:$4 sm:$0xff]   ;;  %v1567_v56 = vld [vmem:[#allocation2 + $0x284] ss:$8 sps:$4 sm:$0xff]  }
  0x42   :  { %822 = vmatprep.subr.bf16.mxu1 %v1477_v57  ;;  %v1565_v57 = vld [vmem:[#allocation2 + $0x280] ss:$8 sps:$4 sm:$0xff]  }
  0x44   :  { %782 = vmatpush2.bf16.msra.mxu0 %v1476_v58  ;;  %v1212_v58 = vcombine.low %v1698_v25, %v1698_v25  ;;  %v160_v25 = vlaneseq }
  0x45   :  { %783 = vmatprep.subr.bf16.mxu0 %v1480_v59  ;;  %823 = vmatpush2.bf16.msra.mxu1 %v1479_v60  ;;  %v1571_v59 = vld [vmem:[%s1782_s3 + $0x78] sm:$0xff]  }
  0x46   :  { %824 = vmatprep.subr.bf16.mxu1 %v1483_v61  ;;  %v1572_v60 = vld [vmem:[%s1782_s3 + $0x38] sm:$0xff]   ;;  %v1573_v61 = vld [vmem:[%s1782_s3 + $0x70] sm:$0xff]  }
  0x48   :  { %784 = vmatpush2.bf16.msra.mxu0 %v1482_v62  ;;  %v1574_v62 = vld [vmem:[%s1782_s3 + $0x30] sm:$0xff]  }
  0x49   :  { %785 = vmatprep.subr.bf16.mxu0 %v1486_v63  ;;  %825 = vmatpush2.bf16.msra.mxu1 %v1485_v0  ;;  %v1575_v63 = vld [vmem:[%s1782_s3 + $0x68] sm:$0xff]  }
  0x4a   :  { %826 = vmatprep.subr.bf16.mxu1 %v1489_v1  ;;  %v1576_v0 = vld [vmem:[%s1782_s3 + $0x28] sm:$0xff]   ;;  %v1577_v1 = vld [vmem:[%s1782_s3 + $0x60] sm:$0xff]  }
  0x4c   :  { %786 = vmatpush2.bf16.msra.mxu0 %v1488_v2  ;;  %v1578_v2 = vld [vmem:[%s1782_s3 + $0x20] sm:$0xff]  }
  0x4d   :  { %837 = vmatprep.subr.bf16.mxu0 %v1496_v3  ;;  %827 = vmatpush2.bf16.msra.mxu1 %v1493_v4  ;;  %v1579_v3 = vld [vmem:[%s1782_s3 + $0x58] sm:$0xff]  }
  0x4e   :  { %878 = vmatprep.subr.bf16.mxu1 %v1522_v6  ;;  %v1580_v4 = vld [vmem:[%s1782_s3 + $0x18] sm:$0xff]   ;;  %v1582_v6 = vld [vmem:[%s1782_s3 + $0x10] sm:$0xff]  }
  0x4f   :  { %788 = vmatmul.mubr.bf16.vlgmr.msra.gmra.mxu0 %v1208_v5  ;;  %v1581_v5 = vld [vmem:[%s1782_s3 + $0x50] sm:$0xff]  }
  0x50   :  { %838 = vmatpush1.bf16.msra.mxu0 %v1494_v7  ;;  %829 = vmatmul.mubr.bf16.vlgmr.msra.gmra.mxu1 %v1210_v8  ;;  %v1583_v7 = vld [vmem:[%s1782_s3 + $0x48] sm:$0xff]  }
  0x51   :  { %839 = vmatprep.subr.bf16.mxu0 %v1501_v9  ;;  %879 = vmatpush1.bf16.msra.mxu1 %v1520_v10  ;;  %v1584_v8 = vld [vmem:[%s1782_s3 + $0x8] sm:$0xff]   ;;  %v1585_v9 = vld [vmem:[%s1782_s3 + $0x40] sm:$0xff]  }
  0x52   :  { %910 = vmatprep.mubr.bf16.mxu1 %v1642_v15  ;;  %880 = vmatprep.subr.bf16.mxu1 %v1528_v11  ;;  %v1586_v10 = vld [vmem:[%s1782_s3] sm:$0xff]   ;;  %v1587_v11 = vld [vmem:[%s1784_s5 + $0x18] sm:$0xff]  }
  0x53   :  { %869 = vmatprep.mubr.bf16.mxu0 %v1213_v27 }
  0x54   :  { %840 = vmatpush1.bf16.msra.mxu0 %v1499_v12  ;;  %v1643_v12 = vmov 0.0  }
  0x55   :  { %841 = vmatprep.subr.bf16.mxu0 %v1504_v13  ;;  %881 = vmatpush1.bf16.msra.mxu1 %v1526_v14 }
  0x56   :  { %882 = vmatprep.subr.bf16.mxu1 %v1534_v16 }
  0x58   :  { %842 = vmatpush1.bf16.msra.mxu0 %v1502_v17 }
  0x59   :  { %843 = vmatprep.subr.bf16.mxu0 %v1507_v18  ;;  %883 = vmatpush1.bf16.msra.mxu1 %v1532_v20 }
  0x5a   :  { %884 = vmatprep.subr.bf16.mxu1 %v1540_v21 }
  0x5c   :  { %844 = vmatpush1.bf16.msra.mxu0 %v1505_v19 }
  0x5d   :  { %845 = vmatprep.subr.bf16.mxu0 %v1510_v22  ;;  %885 = vmatpush1.bf16.msra.mxu1 %v1538_v23 }
  0x5e   :  { %886 = vmatprep.subr.bf16.mxu1 %v1546_v24 }
  0x60   :  { %846 = vmatpush1.bf16.msra.mxu0 %v1508_v26  ;;  %v161_v26 = vshrl.u32 %v160_v25, 7 }
  0x61   :  { %847 = vmatprep.subr.bf16.mxu0 %v1513_v28  ;;  %887 = vmatpush1.bf16.msra.mxu1 %v1544_v29  ;;  %v158_v28 = vld [vmem:[%s1781_s2] sm:$0x3] }
  0x62   :  { %888 = vmatprep.subr.bf16.mxu1 %v1552_v30  ;;  %v162_v27 = vsub.s32 0, %v161_v26  ;;  %v166_v29 = vsub.s32 1, %v161_v26 }
  0x64   :  { %848 = vmatpush1.bf16.msra.mxu0 %v1511_v31  ;;  %v163_v30 = vrot.slane %v158_v28, %v162_v27  ;;  %v167_v31 = vrot.slane %v158_v28, %v166_v29 }
  0x65   :  { %849 = vmatprep.subr.bf16.mxu0 %v1516_v32  ;;  %889 = vmatpush1.bf16.msra.mxu1 %v1550_v33 }
  0x66   :  { %890 = vmatprep.subr.bf16.mxu1 %v1558_v34 }
  0x68   :  { %850 = vmatpush1.bf16.msra.mxu0 %v1514_v35 }
  0x69   :  { %851 = vmatprep.subr.bf16.mxu0 %v1519_v36  ;;  %891 = vmatpush1.bf16.msra.mxu1 %v1556_v37 }
  0x6a   :  { %892 = vmatprep.subr.bf16.mxu1 %v1564_v38 }
  0x6c   :  { %852 = vmatpush1.bf16.msra.mxu0 %v1517_v39 }
  0x6d   :  { %853 = vmatprep.subr.bf16.mxu0 %v1525_v40  ;;  %893 = vmatpush1.bf16.msra.mxu1 %v1562_v41 }
  0x6e   :  { %1350 = vmatprep.subr.bf16.mxu1 %v1571_v59 }
  0x70   :  { %854 = vmatpush2.bf16.msra.mxu0 %v1523_v42  ;;  %911 = vmatmul.mubr.bf16.vlgmr.msra.gmra.mxu1 %v1568_v44 }
  0x71   :  { %855 = vmatprep.subr.bf16.mxu0 %v1531_v43  ;;  %1351 = vmatpush3.bf16.msra.mxu1 %v1572_v60  ;;  %v1344_v60 = vld [vmem:[%s1785_s6] ss:$0 sm:$0xff] }
  0x72   :  { %1352 = vmatprep.subr.bf16.mxu1 %v1573_v61 }
  0x74   :  { %856 = vmatpush2.bf16.msra.mxu0 %v1529_v45 }
  0x75   :  { %857 = vmatprep.subr.bf16.mxu0 %v1537_v46  ;;  %1353 = vmatpush3.bf16.msra.mxu1 %v1574_v62 }
  0x76   :  { %1354 = vmatprep.subr.bf16.mxu1 %v1575_v63 }
  0x78   :  { %858 = vmatpush2.bf16.msra.mxu0 %v1535_v47 }
  0x79   :  { %859 = vmatprep.subr.bf16.mxu0 %v1543_v48  ;;  %1355 = vmatpush3.bf16.msra.mxu1 %v1576_v0  ;;  %v1588_v48 = vld [vmem:[%s1784_s5 + $0x10] sm:$0xff]  }
  0x7a   :  { %1356 = vmatprep.subr.bf16.mxu1 %v1577_v1 }
  0x7c   :  { %860 = vmatpush2.bf16.msra.mxu0 %v1541_v49  ;;  %v1589_v49 = vld [vmem:[%s1784_s5 + $0x8] sm:$0xff]  }
  0x7d   :  { %861 = vmatprep.subr.bf16.mxu0 %v1549_v50  ;;  %1357 = vmatpush3.bf16.msra.mxu1 %v1578_v2  ;;  %v1590_v50 = vld [vmem:[%s1784_s5] sm:$0xff]  }
  0x7e   :  { %1358 = vmatprep.subr.bf16.mxu1 %v1579_v3 }
  0x80   :  { %862 = vmatpush2.bf16.msra.mxu0 %v1547_v51 }
  0x81   :  { %863 = vmatprep.subr.bf16.mxu0 %v1555_v52  ;;  %1359 = vmatpush3.bf16.msra.mxu1 %v1580_v4  ;;  %v1327_v52 = vld [vmem:[%s1783_s4] ss:$0 sm:$0xff]  ;;  %s1645_s4 = smov [#allocation5]  }
  0x82   :  { %1360 = vmatprep.subr.bf16.mxu1 %v1581_v5  ;;  %s1199_s5 = sshll.u32 %s1645_s4, 4  ;;  %s1200_s5 = int_to_ptr.vmem [resolvable:$true] %s1199_s5 }
  0x83   :  { %s1615_s6 = scalar_lea.vmem %s1200_s5, 128  ;;  %p1620_p6 = scmp.lt.s32.totalorder %s1200_s5, %s1200_s5 }
  0x84   :  { %864 = vmatpush2.bf16.msra.mxu0 %v1553_v53  ;;  %p1616_p5 = scmp.ne.s32.totalorder %s1200_s5, %s1615_s6  ;;  %p1621_p7 = scmp.lt.s32.totalorder %s1615_s6, %s1615_s6 }
  0x85   :  { %865 = vmatprep.subr.bf16.mxu0 %v1561_v54  ;;  %1361 = vmatpush3.bf16.msra.mxu1 %v1582_v6 }
  0x86   :  { %1362 = vmatprep.subr.bf16.mxu1 %v1583_v7  ;;  %p1622_p8 = por %p1621_p7, %p1620_p6 }
  0x88   :  { %866 = vmatpush2.bf16.msra.mxu0 %v1559_v55  ;;  %p1623_p9 = pnand %p1622_p8, %p1616_p5 }
  0x89   :  { %867 = vmatprep.subr.bf16.mxu0 %v1567_v56  ;;  %1363 = vmatpush3.bf16.msra.mxu1 %v1584_v8 }
  0x8a   :  { %1364 = vmatprep.subr.bf16.mxu1 %v1585_v9 }
  0x8c   :  { %868 = vmatpush2.bf16.msra.mxu0 %v1565_v57 }
  0x8d   :  { %1365 = vmatpush3.bf16.msra.mxu1 %v1586_v10  ;;  %1377 = vmatprep.subr.bf16.mxu0 %v1643_v12 }
  0x8f   :  { %870 = vmatmul.mubr.bf16.vlgmr.msra.gmra.mxu0 %v1212_v58 }
  0x90   :  { %1378 = vmatpush3.bf16.msra.mxu0 %v1587_v11  ;;  %1385 = vmatprep.mubr.msk.bf16.mxu0 %vm1644_vm0, %v1643_v12 }
  0x91   :  { %1379 = vmatprep.subr.bf16.mxu0 %v1643_v12 }
  0x94   :  { %1380 = vmatpush3.bf16.msra.mxu0 %v1588_v48 }
  0x95   :  { %1381 = vmatprep.subr.bf16.mxu0 %v1643_v12 }
  0x98   :  { %1382 = vmatpush3.bf16.msra.mxu0 %v1589_v49 }
  0x99   :  { %1383 = vmatprep.subr.bf16.mxu0 %v1643_v12 }
  0x9c   :  { %1384 = vmatpush3.bf16.msra.mxu0 %v1590_v50 }
 0x10f   :  { %v789_v13 = vpop.f32.mrf.mxu0 }
 0x110   :  { %v830_v15 = vpop.f32.mrf.mxu1  ;;  %v790_v32 = vadd.f32 %v789_v13, %v163_v30 }
 0x111   :  { %v791_v14 = vpop.f32.mrf.mxu0 }
 0x112   :  { %v832_v17 = vpop.f32.mrf.mxu1  ;;  %v792_v33 = vadd.f32 %v791_v14, %v167_v31  ;;  %v831_v34 = vadd.f32 %v830_v15, %v790_v32 }
 0x113   :  { %v793_v16 = vpop.f32.mrf.mxu0 }
 0x114   :  { %v834_v19 = vpop.f32.mrf.mxu1  ;;  %v833_v36 = vadd.f32 %v832_v17, %v792_v33 }
 0x115   :  { %v794_v18 = vpop.f32.mrf.mxu0 }
 0x116   :  { %v835_v20 = vpop.f32.mrf.mxu1 }
 0x130   :  { %v912_v21 = vpop.f32.mrf.mxu1 }
 0x132   :  { %v914_v22 = vpop.f32.mrf.mxu1 }
 0x134   :  { %v916_v23 = vpop.f32.mrf.mxu1 }
 0x136   :  { %v917_v24 = vpop.f32.mrf.mxu1 }
 0x14f   :  { %v871_v35 = vpop.f32.mrf.mxu0 }
 0x150   :  { %v872_v37 = vadd.f32 %v871_v35, %v831_v34 }
 0x151   :  { %v873_v38 = vpop.f32.mrf.mxu0 }
 0x152   :  { %v913_v39 = vadd.f32 %v912_v21, %v872_v37  ;;  %v874_v40 = vadd.f32 %v873_v38, %v833_v36 }
 0x153   :  { %v875_v41 = vpop.f32.mrf.mxu0 }
 0x154   :  { %v915_v42 = vadd.f32 %v914_v22, %v874_v40  ;;  %v919_v43 = vmax.f32 %v913_v39, 0.0 }
 0x155   :  { %v876_v44 = vpop.f32.mrf.mxu0 }
 0x156   :  { %v920_v45 = vmax.f32 %v915_v42, 0.0  ;;  %v921_v47 = vpack.c.bf16 %v919_v43, %v919_v43 }
 0x158   :  { %v922_v46 = vpack.c.bf16 %v920_v45, %v920_v45 }
 0x15a   :  { %1090 = vmatprep.mubr.bf16.mxu1 %v922_v46 }
 0x15b   :  { %1091 = vmatmul.mubr.bf16.vlgmr.msra.gmra.mxu1 %v921_v47 }
 0x21b   :  { %v1366_v51 = vpop.f32.mrf.mxu1 }
 0x21d   :  { %v1367_v53 = vpop.f32.mrf.mxu1 }
 0x21e   :  { %v1368_v54 = vadd.f32 %v1367_v53, %v1366_v51 }
 0x21f   :  { %v1369_v55 = vpop.f32.mrf.mxu1 }
 0x220   :  { %v1093_v56 = vadd.f32 %v1368_v54, %v1327_v52 }
 0x221   :  { %v1370_v57 = vpop.f32.mrf.mxu1 }
 0x222   :  { %v1098_v58 = vmax.f32 %v1093_v56, 0.0 }
 0x224   :  { %v1099_v59 = vpack.c.bf16 %v1098_v58, %v1098_v58 }
 0x226   :  { %1386 = vmatmul.mubr.msk.bf16.vlgmr.msra.gmra.mxu0 %vm1139_vm1, %v1099_v59 }
 0x2e6   :  { %v1177_v61 = vpop.f32.mrf.mxu0 }
 0x2e7   :  { %v1178_v62 = vadd.f32 %v1344_v60, %v1177_v61 }
 0x2e8   :  { %v1387_v63 = vpop.f32.mrf.mxu0 }
 0x2e9   :  { %1183 = vmax.xlane.f32.xlu0 %v1178_v62 }
 0x2ea   :  { %v1180_v0 = vpop.f32.mrf.mxu0 }
 0x2ec   :  { %v1388_v1 = vpop.f32.mrf.mxu0 }
 0x372   :  { %v1184_v2 = vpop.xlane.xlu0 %1183 }
 0x373   :  { %v1185_v3 = vsub.f32 %v1178_v62, %v1184_v2 }
 0x375   :  { %v1186_v4 = vmul.f32 1.442695, %v1185_v3 }
 0x377   :  { %1591 = vpow2.f32 %v1186_v4 }
 0x384   :  { %v1592_v5 = vpop.eup %1591 }
 0x385   :  { %1188 = vadd.xlane.f32.xlu0 %v1592_v5 }
 0x40e   :  { %v1189_v6 = vpop.xlane.xlu0 %1188 }
 0x40f   :  { %1593 = vrcp.f32 %v1189_v6 }
 0x41c   :  { %v1594_v7 = vpop.eup %1593 }
 0x41d   :  { %v1191_v8 = vmul.f32 %v1594_v7, %v1592_v5 }
 0x41f   :  { %1192 = vst [vmem:[#allocation5] sm:$0xff] %v1191_v8 }
 0x420   :  { %1626 = shalt.err (!%p1623_p9)
}
 0x421   :  { %1202 = dma.vmem_to_hbm [thread:$0]  %s1200_s5, 128, %s1786_s7, [#allocation4]  }
 0x422   :  { %1637 = dma.done.wait [#allocation4], 128  }
 0x423   :  { %1638 = vsyncadd [#allocation4], 4294967168 }
 0x424   :  { %1206 = vsyncpa [#allocation3], 1 }
 0x425   :  { %1207 = vsyncpa [#allocation4], 1 }

</bundles_post_ra>
